<compile_context>
chip_gen: v6e
topology: v6e:2x2x1
jax: 0.10.0
libtpu: 0.0.40
codegen_flags: <defaults>
</compile_context>

<pallas_src>
import numpy as np
import jax
import jax.numpy as jnp
from jax.experimental import pallas as pl
from jax.experimental.pallas import tpu as pltpu


# ---------------------------------------------------------------------------
# Pallas kernels
# ---------------------------------------------------------------------------
def _invconv_kernel_masked(w_ref, x_ref, m_ref, o_ref):
    # w_ref: [C, C]   x_ref: [C, tT]   m_ref: [1, tT]   o_ref: [C, tT]
    z = jnp.dot(w_ref[...], x_ref[...], preferred_element_type=jnp.float32)
    o_ref[...] = (z * m_ref[...].astype(jnp.float32)).astype(o_ref.dtype)


def _invconv_kernel_nomask(w_ref, x_ref, o_ref):
    z = jnp.dot(w_ref[...], x_ref[...], preferred_element_type=jnp.float32)
    o_ref[...] = z.astype(o_ref.dtype)


# ---------------------------------------------------------------------------
# pallas_call wrapper
# ---------------------------------------------------------------------------
def _round_up(v, m):
    return -(-v // m) * m


def _invconv_apply(w_big, x, mask_b1t=None, *, out_dtype, max_tile=4096,
                   vmem_budget_bytes=40 * 1024 * 1024):
    """z[b] = (W_big @ x[b]) [* mask[b]], tiled over (batch, time)."""
    B, C, T = x.shape
    out_itemsize = np.dtype(out_dtype).itemsize
    x_itemsize = np.dtype(x.dtype).itemsize
    w_itemsize = np.dtype(w_big.dtype).itemsize
    m_itemsize = 0 if mask_b1t is None else np.dtype(mask_b1t.dtype).itemsize

    # --- lane tile selection ----------------------------------------------
    if T <= max_tile:
        tT = T
        # v7x has 2 TensorCores: keep the grid product >= 2 when B == 1 so the
        # ("parallel","parallel") sharding doesn't idle a core.
        if B == 1 and T >= 256:
            tT = min(_round_up(-(-T // 2), 128), T)
    else:
        tT = max_tile  # multiple of 512; ragged tail handled by Pallas.

    def _vmem_need(t):
        # double-buffered x and out tiles, (+mask), + double-buffered weight.
        n = 2 * C * t * (x_itemsize + out_itemsize)
        n += 2 * t * m_itemsize
        n += 2 * C * C * w_itemsize
        return n

    # Shrink the tile if it would blow the VMEM budget (keeps headroom on
    # v7x's 64 MiB physical / v5e's small default scoped limit).
    while _vmem_need(tT) > vmem_budget_bytes and tT % 128 == 0 and tT > 512:
        tT = max(512, _round_up(tT // 2, 512))

    grid = (B, pl.cdiv(T, tT))

    # --- specs ---------------------------------------------------------------
    # Weight index_map is constant -> it stays resident in VMEM across the grid.
    in_specs = [
        pl.BlockSpec((C, C), lambda b, i: (0, 0)),
        pl.BlockSpec((None, C, tT), lambda b, i: (b, 0, i)),
    ]
    args = [w_big, x]
    if mask_b1t is not None:
        in_specs.append(pl.BlockSpec((None, 1, tT), lambda b, i: (b, 0, i)))
        args.append(mask_b1t)
        kernel = _invconv_kernel_masked
    else:
        kernel = _invconv_kernel_nomask

    flops = 2 * B * C * C * T  # dense-inflated (matches what the kernel runs)
    bytes_accessed = (B * C * T * (x_itemsize + out_itemsize)
                      + B * T * m_itemsize + C * C * w_itemsize)
    vmem_limit = int(min(max(_vmem_need(tT) + (4 << 20), 32 << 20), 48 << 20))

    return pl.pallas_call(
        kernel,
        out_shape=jax.ShapeDtypeStruct((B, C, T), out_dtype),
        grid_spec=pltpu.PrefetchScalarGridSpec(
            num_scalar_prefetch=0,
            grid=grid,
            in_specs=in_specs,
            out_specs=pl.BlockSpec((None, C, tT), lambda b, i: (b, 0, i)),
        ),
        compiler_params=pltpu.CompilerParams(
            dimension_semantics=("parallel", "parallel"),
            vmem_limit_bytes=vmem_limit),
        cost_estimate=pl.CostEstimate(
            flops=flops, transcendentals=0, bytes_accessed=bytes_accessed),
    )(*args)


# ---------------------------------------------------------------------------
# Parameter helpers
# ---------------------------------------------------------------------------
def make_invconv_weight(key, num_splits):
    """QR init of an SxS normal matrix with det forced positive (as in PyTorch)."""
    w_init = jax.random.normal(key, (num_splits, num_splits), dtype=jnp.float32)
    q, _ = jnp.linalg.qr(w_init)
    det = jnp.linalg.det(q)
    q = q.at[:, 0].set(jnp.where(det < 0, -q[:, 0], q[:, 0]))
    return q


def expand_split_weight(weight, channels, num_splits):
    """Fold the module's view/permute into a block-structured [C, C] weight.

    Channel c = p*(G*H) + g*H + h (p in {0,1}, g in [G), h in [H)) maps to
    split index s = p*H + h, group g.  The 1x1 conv mixes only within a group:
        W_big[co, ci] = W[s(co), s(ci)] * (g(co) == g(ci)).
    """
    C, S = channels, num_splits
    G, H = C // S, S // 2
    c_idx = jnp.arange(C)
    p = c_idx // (G * H)
    g = (c_idx % (G * H)) // H
    h = c_idx % H
    s = p * H + h
    w_big = weight[s[:, None], s[None, :]]
    w_big = w_big * (g[:, None] == g[None, :]).astype(weight.dtype)
    return w_big


# ---------------------------------------------------------------------------
# Forward pass (mirrors InvConvNear.forward)
# ---------------------------------------------------------------------------
def invconv_near_forward(x, weight, x_mask=None, num_splits=4,
                         no_jacobian=False, reverse=False,
                         compute_dtype=jnp.bfloat16, max_tile=4096):
    """x: [B, C, T], x_mask: [B, 1, T] or None, weight: [S, S].

    Returns (z [B, C, T] in x.dtype, logdet [B] or None).
    compute_dtype: dtype of the streamed activations / MXU operands
                   (bf16 default; pass jnp.float32 for an exact path).
    """
    B, C, T = x.shape
    S = num_splits
    assert C % S == 0

    if x_mask is None:
        mask_b1t = None
        x_len = jnp.ones((B,), dtype=x.dtype) * T
    else:
        mask_b1t = x_mask.astype(x.dtype)
        x_len = jnp.sum(mask_b1t, axis=(1, 2))

    if reverse:
        w_used = jnp.linalg.inv(weight.astype(jnp.float32))
        logdet = None
    else:
        w_used = weight.astype(jnp.float32)
        if no_jacobian:
            logdet = jnp.zeros((B,), dtype=x.dtype)
        else:
            # torch.logdet semantics: NaN if det <= 0 (init guarantees det > 0).
            sign, logabsdet = jnp.linalg.slogdet(weight.astype(jnp.float32))
            logdet_w = jnp.where(sign > 0, logabsdet, jnp.nan)
            logdet = logdet_w * (C / S) * x_len

    w_big = expand_split_weight(w_used, C, S)  # tiny one-off [C, C]

    # bf16 activation stream (halves HBM read traffic; f32 accumulation in the
    # kernel dot).  Mask is 0/1 so the cast is exact.
    x_stream = x.astype(compute_dtype)
    w_stream = w_big.astype(compute_dtype)
    m_stream = None if mask_b1t is None else mask_b1t.astype(compute_dtype)

    z = _invconv_apply(w_stream, x_stream, m_stream,
                       out_dtype=x.dtype, max_tile=max_tile)
    # TODO(synk): output could also be streamed in bf16 (another ~1.3x HBM win)
    # if the downstream flow tolerates bf16 activations.
    return z, logdet


# ---------------------------------------------------------------------------
# Pure-JAX reference (mirrors the PyTorch code path) for validation
# ---------------------------------------------------------------------------
def _reference_forward(x, weight, x_mask, num_splits, compute_dtype=jnp.float32):
    B, C, T = x.shape
    S = num_splits
    G, H = C // S, S // 2
    mask = jnp.ones((B, 1, T), x.dtype) if x_mask is None else x_mask.astype(x.dtype)
    x_len = jnp.sum(mask, axis=(1, 2))
    xc = x.astype(compute_dtype)
    wc = weight.astype(compute_dtype)
    x_r = xc.reshape(B, 2, G, H, T).transpose(0, 1, 3, 2, 4).reshape(B, S, G, T)
    z_r = jnp.einsum("os,bsgt->bogt", wc, x_r, preferred_element_type=jnp.float32)
    z = z_r.reshape(B, 2, H, G, T).transpose(0, 1, 3, 2, 4).reshape(B, C, T)
    z = z.astype(x.dtype) * mask
    sign, logabsdet = jnp.linalg.slogdet(weight.astype(jnp.float32))
    logdet_w = jnp.where(sign > 0, logabsdet, jnp.nan)
    logdet = logdet_w * (C / S) * x_len
    return z, logdet


if __name__ == "__main__":
    key = jax.random.PRNGKey(0)
    k_w, k_x, k_x2, k_x3 = jax.random.split(key, 4)

    S = 4
    weight = make_invconv_weight(k_w, S)

    # --- test 1: exact f32 path, single full-T tile, masked -----------------
    B, C, T = 2, 8, 192
    x = jax.random.normal(k_x, (B, C, T), dtype=jnp.float32)
    lengths = jnp.array([T, T // 2], dtype=jnp.int32)
    x_mask = (jnp.arange(T)[None, None, :] < lengths[:, None, None]).astype(jnp.float32)

    z, logdet = invconv_near_forward(x, weight, x_mask, num_splits=S,
                                     compute_dtype=jnp.float32)
    jax.block_until_ready(z)
    z_ref, logdet_ref = _reference_forward(x, weight, x_mask, S)
    assert jnp.allclose(z, z_ref, atol=1e-5, rtol=1e-5), "z mismatch (test 1)"
    assert jnp.allclose(logdet, logdet_ref, atol=1e-5, rtol=1e-5), "logdet mismatch (test 1)"

    # reverse path (exact): should reconstruct x * mask
    x_rec, logdet_rev = invconv_near_forward(z, weight, x_mask, num_splits=S,
                                             reverse=True, compute_dtype=jnp.float32)
    jax.block_until_ready(x_rec)
    assert logdet_rev is None
    assert jnp.allclose(x_rec, x * x_mask, atol=1e-4, rtol=1e-4), "reverse mismatch (test 1)"

    # --- test 2: bf16 stream, multi-tile grid + ragged tail, masked ---------
    B2, C2, T2 = 2, 16, 1000
    x2 = jax.random.normal(k_x2, (B2, C2, T2), dtype=jnp.float32)
    lengths2 = jnp.array([T2, 700], dtype=jnp.int32)
    x_mask2 = (jnp.arange(T2)[None, None, :] < lengths2[:, None, None]).astype(jnp.float32)

    z2, logdet2 = invconv_near_forward(x2, weight, x_mask2, num_splits=S,
                                       max_tile=256)  # bf16 default stream
    jax.block_until_ready(z2)
    z2_ref, _ = _reference_forward(x2, weight, x_mask2, S, compute_dtype=jnp.bfloat16)
    _, logdet2_ref = _reference_forward(x2, weight, x_mask2, S)
    assert jnp.allclose(z2, z2_ref, atol=5e-3, rtol=5e-3), "z mismatch (test 2, bf16)"
    assert jnp.allclose(logdet2, logdet2_ref, atol=1e-4, rtol=1e-4), "logdet mismatch (test 2)"

    # --- test 3: no-mask kernel variant + B==1 tile split (megacore) --------
    B3, C3, T3 = 1, 8, 384
    x3 = jax.random.normal(k_x3, (B3, C3, T3), dtype=jnp.float32)
    z3, logdet3 = invconv_near_forward(x3, weight, None, num_splits=S)  # bf16 default
    jax.block_until_ready(z3)
    z3_ref, logdet3_ref = _reference_forward(x3, weight, None, S, compute_dtype=jnp.bfloat16)
    assert jnp.allclose(z3, z3_ref, atol=5e-3, rtol=5e-3), "z mismatch (test 3, no mask)"
    _, logdet3_ref_f32 = _reference_forward(x3, weight, None, S)
    assert jnp.allclose(logdet3, logdet3_ref_f32, atol=1e-4, rtol=1e-4), "logdet mismatch (test 3)"

    print("KERNEL_OK")
</pallas_src>

<mosaic_0001>
module attributes {stable_mosaic.version = 11 : i64} {
  func.func @_invconv_kernel_masked(%arg0: i32, %arg1: i32, %arg2: memref<8x8xf32, #tpu.memory_space<vmem>>, %arg3: memref<1x8x192xf32, #tpu.memory_space<vmem>>, %arg4: memref<1x1x192xf32, #tpu.memory_space<vmem>>, %arg5: memref<1x8x192xf32, #tpu.memory_space<vmem>>) attributes {dimension_semantics = [#tpu.dimension_semantics<parallel>, #tpu.dimension_semantics<parallel>], iteration_bounds = array<i64: 2, 1>, scalar_prefetch = 0 : i64, scratch_operands = 0 : i64, tpu.core_type = #tpu.core_type<tc>, window_params = [{pipeline_mode = #tpu.pipeline_mode<synchronous>, transform_indices = @transform_0, window_bounds = array<i64: 8, 8>}, {transform_indices = @transform_1, window_bounds = array<i64: 1, 8, 192>}, {transform_indices = @transform_2, window_bounds = array<i64: 1, 1, 192>}, {transform_indices = @transform_3, window_bounds = array<i64: 1, 8, 192>}]} {
    %c0 = arith.constant 0 : index
    %c0_0 = arith.constant 0 : index
    %0 = vector.load %arg2[%c0, %c0_0] : memref<8x8xf32, #tpu.memory_space<vmem>>, vector<8x8xf32>
    %c0_1 = arith.constant 0 : index
    %c0_2 = arith.constant 0 : index
    %c0_3 = arith.constant 0 : index
    %1 = vector.load %arg3[%c0_1, %c0_2, %c0_3] : memref<1x8x192xf32, #tpu.memory_space<vmem>>, vector<1x8x192xf32>
    %2 = vector.shape_cast %1 : vector<1x8x192xf32> to vector<8x192xf32>
    %cst = arith.constant dense<0.000000e+00> : vector<8x192xf32>
    %3 = tpu.matmul %0, %2, %cst {dimension_numbers = #tpu.dot_dimension_numbers<[1], [0], [0], [1], [0, 0, 1, 1], [], []>} : vector<8x8xf32>, vector<8x192xf32>, vector<8x192xf32> -> vector<8x192xf32>
    %c0_4 = arith.constant 0 : index
    %c0_5 = arith.constant 0 : index
    %c0_6 = arith.constant 0 : index
    %4 = vector.load %arg4[%c0_4, %c0_5, %c0_6] : memref<1x1x192xf32, #tpu.memory_space<vmem>>, vector<1x1x192xf32>
    %5 = vector.shape_cast %4 : vector<1x1x192xf32> to vector<1x192xf32>
    %6 = vector.broadcast %5 : vector<1x192xf32> to vector<8x192xf32>
    %7 = arith.mulf %3, %6 : vector<8x192xf32>
    %c0_7 = arith.constant 0 : index
    %c0_8 = arith.constant 0 : index
    %c0_9 = arith.constant 0 : index
    %8 = vector.load %arg5[%c0_7, %c0_8, %c0_9] : memref<1x8x192xf32, #tpu.memory_space<vmem>>, vector<1x8x192xf32>
    %9 = vector.shape_cast %8 : vector<1x8x192xf32> to vector<8x192xf32>
    %10 = vector.shape_cast %7 : vector<8x192xf32> to vector<1x8x192xf32>
    tpu.vector_store %arg5[%c0_7, %c0_8, %c0_9], %10 {strides = array<i32>} : memref<1x8x192xf32, #tpu.memory_space<vmem>>, vector<1x8x192xf32>,
    return
  }
  func.func @transform_0(%arg0: i32, %arg1: i32) -> (i32, i32) {
    %c0_i32 = arith.constant 0 : i32
    %c0_i32_0 = arith.constant 0 : i32
    %c0_i32_1 = arith.constant 0 : i32
    return %c0_i32, %c0_i32_0 : i32, i32
  }
  func.func @transform_1(%arg0: i32, %arg1: i32) -> (i32, i32, i32) {
    %c0_i32 = arith.constant 0 : i32
    %c0_i32_0 = arith.constant 0 : i32
    return %arg0, %c0_i32, %arg1 : i32, i32, i32
  }
  func.func @transform_2(%arg0: i32, %arg1: i32) -> (i32, i32, i32) {
    %c0_i32 = arith.constant 0 : i32
    %c0_i32_0 = arith.constant 0 : i32
    return %arg0, %c0_i32, %arg1 : i32, i32, i32
  }
  func.func @transform_3(%arg0: i32, %arg1: i32) -> (i32, i32, i32) {
    %c0_i32 = arith.constant 0 : i32
    %c0_i32_0 = arith.constant 0 : i32
    return %arg0, %c0_i32, %arg1 : i32, i32, i32
  }
}

</mosaic_0001>

<bundles_post_ra>
// kernel: tpu_custom_call.1
= control target key start
LH: loop header
LB: loop body
LE: loop exit
PB: predicated region body
PF: predicated region fallthrough
CT: control target
= control target key end

     0   :  { %8 = vsyncpa [#allocation3], 0  ;;  %s977_s0 = inlined_call_operand.hbm [shape: f32[8,8], index: 0, kind: input, shape index: {}]   ;;  %s978_s1 = inlined_call_operand.hbm [shape: f32[2,8,192], index: 1, kind: input, shape index: {}]   ;;  %s979_s2 = inlined_call_operand.hbm [shape: f32[2,1,192], index: 2, kind: input, shape index: {}]   ;;  %s980_s3 = inlined_call_operand.hbm [shape: f32[2,8,192], index: 3, kind: output, shape index: {}]  }
   0x1   :  { %9 = vsyncpa [#allocation6], 0 }
   0x2   :  { %11 = vsyncpa [#allocation6 + $0x1], 0 }
   0x3   :  { %12 = vsyncpa [#allocation4], 0 }
   0x4   :  { %14 = vsyncpa [#allocation4 + $0x1], 0  ;;  %s788_s12 = smov 0   ;;  %s790_s13 = smov 0  }
   0x5   :  { %s792_s14 = smov 0   ;;  %s794_s15 = smov 0  }
   0x6   :  { %s796_s16 = smov 0   ;;  %s798_s17 = smov 0  }
   0x7 LB: > { %s32_s18 = sadd.s32 1, %s757_s16  ;;  %s62_s19 = sadd.s32 1, %s749_s14  ;;  %s761_s17 = sphi %s798_s17, %s20_s17   ;;  %s757_s16 = sphi %s796_s16, %s1000_s16   ;;  %s753_s15 = sphi %s794_s15, %s999_s15   ;;  %s749_s14 = sphi %s792_s14, %s998_s14   ;;  %s745_s13 = sphi %s790_s13, %s997_s13   ;;  %s741_s12 = sphi %s788_s12, %s996_s12  }
   0x8   : > { %p34_p0 = scmp.ge.s32.totalorder %s32_s18, 2  ;;  %p69_p1 = scmp.ne.s32.totalorder %s749_s14, %s745_s13 }
   0x9   : > { %p70_p2 = scmp.eq.s32.totalorder %s761_s17, 0  ;;  %p542_p5 = scmp.lt.s32.totalorder %s761_s17, 2 }
   0xa   : > { %s1002_s18 = smov (%p34_p0, %s32_s18), 0  ;;  %s166_s21 = sand.u32 1, %s761_s17  }
   0xb   : > { %p71_p4 = por %p70_p2, %p69_p1  ;;  %s57_s20 = ssub.s32 %s757_s16, %s1002_s18 }
   0xc   : > { %p60_p6 = scmp.eq.s32.totalorder %s57_s20, 0  ;;  %s168_s22 = sand.u32 1, %s749_s14  }
   0xd   : > { %s513_s23 = sshll.u32 %s757_s16, 8  ;;  %s496_s25 = sshll.u32 %s168_s22, 4 }
   0xe   : > { %s836_s24 = scalar_select %p60_p6, %s749_s14, %s62_s19  }
   0xf   : > { %s178_s28 = scalar_lea.hbm %s978_s1, %s513_s23  ;;  %p841_p7 = pnand %p542_p5, %p71_p4 }
  0x10   : > { %s170_s30 = scalar_lea.vmem [#allocation5], %s496_s25  ;;  %s845_s5 = sshll.u32 %s168_s22, 1 }
  0x11   : > { %s180_s4 = sshll.u32 %s170_s30, 4  ;;  %s847_s6 = scalar_lea.sflag [#allocation6], %s166_s21  ;;  %s181_s4 = int_to_ptr.vmem [resolvable:$true] %s180_s4 }
  0x12   : > { %p597_p8 = pneg %p841_p7  ;;  %s608_s7 = scalar_lea.vmem %s181_s4, 256 }
  0x13   : > { %p609_p9 = scmp.ne.s32.totalorder %s181_s4, %s608_s7  ;;  %s763_s8 = smov [#allocation5]  }
  0x14   : > { %s613_s9 = sshll.u32 %s763_s8, 4  ;;  %s614_s9 = int_to_ptr.vmem [resolvable:$false] %s613_s9 }
  0x15   : > { %p611_p10 = pnand %p609_p9, %p597_p8  ;;  %s615_s10 = scalar_lea.vmem %s614_s9, 512 }
  0x16   : > { %p616_p12 = scmp.lt.s32.totalorder %s181_s4, %s614_s9  ;;  %p617_p13 = scmp.lt.s32.totalorder %s615_s10, %s608_s7 }
  0x17   : > { %p612_p11 = pneg %p611_p10 }
  0x18   : > { %p618_p0 = por %p617_p13, %p616_p12 }
  0x1a   : > { %p619_p2 = pnand %p618_p0, %p612_p11 }
  0x1c   : > { %622 = shalt.err (!%p619_p2)
}
  0x1d   : > { %533 = dma.hbm_to_vmem [thread:$0]  (!%p841_p7), %s178_s28, 256, %s181_s4, %s847_s6  }
  0x1e   : > { %s858_s11 = sadd.s32 4294967295, %s761_s17   ;;  %s492_s19 = sadd.s32 4294967294, %s761_s17  }
  0x1f   : > { %p75_p4 = scmp.ne.s32.totalorder %s745_s13, %s741_s12  ;;  %p982_p5 = scmp.eq.s32.totalorder %s858_s11, 0 }
  0x20   : > { %p129_p6 = scmp.eq.s32.totalorder %s858_s11, 1  ;;  %p135_p9 = scmp.eq.s32.totalorder %s492_s19, 1 }
  0x21   : > { %p867_p10 = por %p982_p5, %p75_p4  ;;  %p493_p11 = scmp.ge.s32.totalorder %s761_s17, 1 }
  0x22   : > { %p875_p12 = por %p129_p6, %p69_p1  ;;  %p879_p13 = por %p135_p9, %p75_p4 }
  0x23   : > { %s985_s20 = scalar_select %p867_p10, 1, 0 }
  0x24   : > { %s986_s21 = scalar_select %p875_p12, 1, 0 }
  0x25   : > { %s987_s22 = scalar_select %p879_p13, 1, 0 }
  0x26   : > { %p142_p0 = scmp.lt.s32.totalorder %s761_s17, 3  ;;  %s764_s25 = smov [#allocation2]  }
  0x27   : > { %s155_s26 = sshll.u32 %s764_s25, 4  ;;  %s514_s27 = sshll.u32 %s757_s16, 5  ;;  %s894_s26 = int_to_ptr.vmem [resolvable:$true] %s155_s26 }
  0x28   : > { %p884_p2 = pnand %p493_p11, %p142_p0  ;;  %s199_s4 = scalar_lea.hbm %s979_s2, %s514_s27 }
  0x29   : > { %s191_s7 = scalar_lea.vmem [#allocation7], %s845_s5  ;;  %s765_s19 = smov [#allocation7]  }
  0x2a   : > { %p526_p3 = pneg %p884_p2  ;;  %s201_s8 = sshll.u32 %s191_s7, 4  ;;  %s202_s8 = int_to_ptr.vmem [resolvable:$true] %s201_s8 }
  0x2b   : > { %s636_s10 = scalar_lea.vmem %s202_s8, 32  ;;  %s641_s25 = sshll.u32 %s765_s19, 4  ;;  %s642_s25 = int_to_ptr.vmem [resolvable:$false] %s641_s25 }
  0x2c   : > { %p899_p1 = pnand %p526_p3, %p982_p5  ;;  %p637_p4 = scmp.ne.s32.totalorder %s202_s8, %s636_s10 }
  0x2d   : > { %s643_s27 = scalar_lea.vmem %s642_s25, 64  ;;  %p644_p11 = scmp.lt.s32.totalorder %s202_s8, %s642_s25 }
  0x2e   : > { %p639_p6 = pnand %p637_p4, %p597_p8  ;;  %p645_p0 = scmp.lt.s32.totalorder %s643_s27, %s636_s10 }
  0x30   : > { %p640_p9 = pneg %p639_p6  ;;  %p646_p13 = por %p645_p0, %p644_p11 }
  0x32   : > { %p647_p12 = pnand %p646_p13, %p640_p9 }
  0x34   : > { %650 = shalt.err (!%p647_p12)
}
  0x35   : > { %536 = dma.hbm_to_vmem [thread:$0]  (!%p841_p7), %s199_s4, 32, %s202_s8, %s847_s6  }
  0x36   : > { %p653_p3 = pneg %p899_p1  ;;  %s662_s5 = scalar_lea.vmem %s894_s26, 128 }
  0x37   : > { %p663_p8 = scmp.ne.s32.totalorder %s894_s26, %s662_s5  ;;  %p670_p5 = scmp.lt.s32.totalorder %s894_s26, %s894_s26 }
  0x38   : > { %p671_p10 = scmp.lt.s32.totalorder %s662_s5, %s662_s5 }
  0x39   : > { %p665_p4 = pnand %p663_p8, %p653_p3 }
  0x3a   : > { %p672_p11 = por %p671_p10, %p670_p5 }
  0x3b   : > { %p666_p6 = pneg %p665_p4 }
  0x3d   : > { %p673_p13 = pnand %p672_p11, %p666_p6 }
  0x3f   : > { %676 = shalt.err (!%p673_p13)
}
  0x40   : > { %529 = dma.hbm_to_vmem [thread:$0]  (!%p899_p1), %s977_s0, 128, %s894_s26, [#allocation3]  }
  0x41   : > { %210 = sbr.rel (%p884_p2) target bundleno = 289 (0x121), region = 32  ;;  %p990_p7 = scmp.eq.s32.totalorder (!%p884_p2), %s858_s11, 0 }
  0x46   : > { %728 = dma.done.wait (%p990_p7), [#allocation3], 128   ;;  %p991_p12 = pmov %p990_p7 }
  0x47   : > { %s216_s6 = sand.u32 1, %s858_s11   ;;  %s929_s30 = sand.u32 1, %s745_s13  }
  0x48   : > { %730 = vsyncadd (%p991_p12), [#allocation3], 4294967168  ;;  %s504_s4 = sshll.u32 %s929_s30, 4  ;;  %s217_s7 = scalar_lea.sflag [#allocation6], %s216_s6 }
  0x49   : > { %s220_s8 = scalar_lea.vmem [#allocation5], %s504_s4  ;;  %p992_p5 = scmp.ne.s32.totalorder %s985_s20, 0 }
  0x4b   : > { %732 = dma.done.wait (%p992_p5), %s217_s7, 288  }
  0x4c   : > { %734 = vsyncadd (%p992_p5), %s217_s7, 4294967008  ;;  %v766_v0 = vmov 0.0   ;;  %v262_v1 = vld [vmem:[%s220_s8 + $0x8] sm:$0xff]  ;;  %v261_v2 = vld [vmem:[%s220_s8] sm:$0xff]  ;;  %vm263_vm0 = vcmask 64512   ;;  %v340_v4 = vlaneseq  ;;  %s505_s11 = sshll.u32 %s929_s30, 1 }
  0x4d   : > { %331 = vmatprep.mubr.f32.mxu0 %v766_v0  ;;  %v260_v3 = vld [vmem:[#allocation2] sm:$0xff]  ;;  %297 = vmatprep.subr.mxu0 %v262_v1  ;;  %s229_s23 = scalar_lea.vmem [#allocation7], %s505_s11  ;;  %s515_s20 = sshll.u32 %s753_s15, 8  ;;  %vm353_vm1 = vcmask 523264  }
  0x4e   : > { %298 = vmatpush1.msra.mxu0 %v261_v2  ;;  %v341_v5 = vshrl.u32 %v340_v4, 7  ;;  %v338_v7 = vld [vmem:[%s229_s23] sm:$0x3]  ;;  %s256_s26 = scalar_lea.vmem [#allocation8], %s504_s4  ;;  %s370_s25 = scalar_lea.hbm %s980_s3, %s515_s20 }
  0x4f   : > { %507 = vmatmul.mubr.msk.f32.vlgmr.msra.gmra.mxu0 %vm263_vm0, %v260_v3  ;;  %s372_s9 = sshll.u32 %s256_s26, 4  ;;  %s356_s27 = scalar_lea.sflag [#allocation4], %s929_s30  ;;  %s373_s9 = int_to_ptr.vmem [resolvable:$true] %s372_s9 }
  0x50   : > { %v342_v6 = vsub.s32 0, %v341_v5  ;;  %v346_v8 = vsub.s32 1, %v341_v5  ;;  %s677_s5 = scalar_lea.vmem %s373_s9, 256  ;;  %p993_p2 = scmp.ne.s32.totalorder %s986_s21, 0 }
  0x51   : > { %p678_p10 = scmp.ne.s32.totalorder %s373_s9, %s677_s5  ;;  %s767_s15 = smov [#allocation8]  }
  0x52   : > { %v343_v9 = vrot.slane %v338_v7, %v342_v6  ;;  %v347_v10 = vrot.slane %v338_v7, %v346_v8  ;;  %s681_s29 = sshll.u32 %s767_s15, 4  ;;  %s682_s29 = int_to_ptr.vmem [resolvable:$false] %s681_s29 }
  0x53   : > { %p679_p1 = pnand %p678_p10, %p993_p2  ;;  %s683_s28 = scalar_lea.vmem %s682_s29, 512 }
  0x54   : > { %p684_p0 = scmp.lt.s32.totalorder %s373_s9, %s682_s29  ;;  %p685_p3 = scmp.lt.s32.totalorder %s683_s28, %s677_s5 }
  0x55   : > { %p680_p9 = pneg %p679_p1 }
  0x56   : > { %p686_p8 = por %p685_p3, %p684_p0 }
  0x58   : > { %p687_p4 = pnand %p686_p8, %p680_p9 }
 0x10f   : > { %v333_v11 = vpop.f32.mrf.mxu0 }
 0x110   : > { %v350_v12 = vmul.f32 %v343_v9, %v333_v11 }
 0x111   : > { %v335_v13 = vpop.f32.mrf.mxu0 }
 0x112   : > { %352 = vst [vmem:[%s256_s26] sm:$0xff] %v350_v12  ;;  %v351_v14 = vmul.f32 %v347_v10, %v335_v13 }
 0x114   : > { %354 = vst.msk [vmem:[%s256_s26 + $0x8] sm:$0xff] %vm353_vm1, %v351_v14 }
 0x115   : > { %690 = shalt.err (!%p687_p4)
}
 0x116   : > { %s691_s6 = scalar_lea.hbm %s370_s25, 256  ;;  %s695_s7 = scalar_lea.hbm %s980_s3, 512 }
 0x117   : > { %p692_p6 = scmp.ne.s32.totalorder %s370_s25, %s691_s6  ;;  %p696_p7 = scmp.lt.s32.totalorder %s370_s25, %s980_s3 }
 0x118   : > { %p697_p12 = scmp.lt.s32.totalorder %s695_s7, %s691_s6 }
 0x119   : > { %p693_p11 = pnand %p692_p6, %p993_p2 }
 0x11a   : > { %p698_p5 = por %p697_p12, %p696_p7 }
 0x11b   : > { %p694_p13 = pneg %p693_p11 }
 0x11d   : > { %p699_p10 = pnand %p698_p5, %p694_p13 }
 0x11f   : > { %702 = shalt.err (!%p699_p10)
}
 0x120   : > { %524 = dma.vmem_to_hbm [thread:$0]  (%p993_p2), %s373_s9, 256, %s370_s25, %s356_s27  }
 0x121 PF: > { %s384_s23 = sand.u32 1, %s741_s12   ;;  %p994_p1 = scmp.ne.s32.totalorder %s987_s22, 0 }
 0x122   : > { %p995_p9 = scmp.ge.s32.totalorder %s761_s17, 2  ;;  %s385_s20 = scalar_lea.sflag [#allocation4], %s384_s23 }
 0x124   : > { %p538_p0 = pnand %p995_p9, %p994_p1 }
 0x126   : > { %p539_p3 = pneg %p538_p0 }
 0x128   : > { %736 = dma.done.wait (%p539_p3), %s385_s20, 256  }
 0x129   : > { %738 = vsyncadd (%p539_p3), %s385_s20, 4294967040  ;;  %s20_s17 = sadd.s32 1, %s761_s17   ;;  %s996_s12 = smov %s745_s13 }
 0x12a   : > { %p17_p8 = scmp.ge.s32.totalorder %s20_s17, 4   ;;  %s997_s13 = smov %s749_s14 }
 0x12b   : > { %s998_s14 = smov %s836_s24  ;;  %s999_s15 = smov %s757_s16 }
 0x12c   : > { %s1000_s16 = smov %s1002_s18  ;;  %19 = sbr.rel (!%p17_p8) target bundleno = 7 (0x7), region = 93 }
 0x131   :  { %390 = vsyncpa [#allocation3], 1 }
 0x132   :  { %392 = vsyncpa [#allocation3 + $0x1], 1 }
 0x133   :  { %393 = vsyncpa [#allocation6], 1 }
 0x134   :  { %395 = vsyncpa [#allocation6 + $0x1], 1 }
 0x135   :  { %396 = vsyncpa [#allocation4], 1 }
 0x136   :  { %398 = vsyncpa [#allocation4 + $0x1], 1 }

</bundles_post_ra>
